<compile_context>
chip_gen: v6e
topology: v6e:2x2x1
jax: 0.10.0
libtpu: 0.0.40
codegen_flags: <defaults>
</compile_context>

<pallas_src>
import jax
import jax.numpy as jnp
from jax.experimental import pallas as pl
from jax.experimental.pallas import tpu as pltpu

INPUT_DIM = 300
OUTPUT_DIM = 250

_MAX_TB = 1024   # batch-tile cap: ~5 MiB VMEM at 1024 rows incl. double buffers


def _round_up(x, m):
    return ((x + m - 1) // m) * m


def _sublane(dtype):
    # second-to-last-dim packing: 8 rows for 32-bit dtypes, 16 for 16-bit dtypes
    return 8 if jnp.dtype(dtype).itemsize >= 4 else 16


def linear_relu_kernel(x_ref, w_ref, b_ref, o_ref):
    # x_ref: (TB, K) input dtype; w_ref: (K, N) bf16; b_ref: (1, N) f32.
    x = x_ref[...].astype(w_ref.dtype)                                  # in-kernel cast (VPU, free)
    acc = jnp.dot(x, w_ref[...], preferred_element_type=jnp.float32)   # MXU, f32 accumulation
    acc = acc + b_ref[...]                                              # f32 epilogue (VPU)
    o_ref[...] = jnp.maximum(acc, 0.0).astype(o_ref.dtype)


def prepare_params(weight, bias, compute_dtype=jnp.bfloat16):
    """One-time layout prep (outside the hot path).

    weight: (output_dim, input_dim) -- PyTorch nn.Linear layout
    bias:   (output_dim,)
    Returns w_t (input_dim, output_dim) compute_dtype, b (1, output_dim) f32.
    No padding: the kernel uses full-extent blocks and Mosaic masks internally.
    """
    w_t = weight.T.astype(compute_dtype)            # (300, 250), ~150 KiB, VMEM-resident
    b = bias.reshape(1, -1).astype(jnp.float32)     # (1, 250)
    return w_t, b


def _choose_tb(batch, sublane):
    if batch <= 2 * sublane:
        return batch                                # single full-extent block (grid = 1)
    # Aim for >= 2 grid steps so v7x shards the batch axis across both TCs,
    # capped at _MAX_TB so per-step tiles amortize the ~0.35 us step overhead.
    half = _round_up(-(-batch // 2), sublane)
    return min(_MAX_TB, half)


def source_nn_forward(x, w_t, b, out_dtype=jnp.float32):
    """relu(x @ W^T + b). x: (B, input_dim). Returns (B, output_dim) out_dtype."""
    B, K = x.shape
    Kw, N = w_t.shape
    assert K == Kw, (K, Kw)

    sub = max(_sublane(x.dtype), _sublane(out_dtype))
    tb = _choose_tb(B, sub)
    grid = (pl.cdiv(B, tb),)

    cost = pl.CostEstimate(
        flops=2 * B * K * N,
        transcendentals=0,
        bytes_accessed=(x.size * x.dtype.itemsize
                        + w_t.size * w_t.dtype.itemsize
                        + b.size * b.dtype.itemsize
                        + B * N * jnp.dtype(out_dtype).itemsize),
    )

    return pl.pallas_call(
        linear_relu_kernel,
        out_shape=jax.ShapeDtypeStruct((B, N), out_dtype),
        grid=grid,
        in_specs=[
            pl.BlockSpec((tb, K), lambda i: (i, 0)),   # x: tiled over batch, full-K block
            pl.BlockSpec((Kw, N), lambda i: (0, 0)),   # weight: resident across grid
            pl.BlockSpec((1, N), lambda i: (0, 0)),    # bias: resident across grid
        ],
        out_specs=pl.BlockSpec((tb, N), lambda i: (i, 0)),
        compiler_params=pltpu.CompilerParams(
            dimension_semantics=("parallel",),         # v7x: both TensorCores over batch
        ),
        cost_estimate=cost,
    )(x, w_t, b)


def init_params(key, input_dim=INPUT_DIM, output_dim=OUTPUT_DIM):
    """Deterministic init matching nn.Linear's uniform(-1/sqrt(fan_in), 1/sqrt(fan_in))."""
    kw, kb = jax.random.split(key)
    bound = 1.0 / jnp.sqrt(jnp.float32(input_dim))
    weight = jax.random.uniform(
        kw, (output_dim, input_dim), jnp.float32, minval=-bound, maxval=bound
    )
    bias = jax.random.uniform(
        kb, (output_dim,), jnp.float32, minval=-bound, maxval=bound
    )
    return weight, bias


if __name__ == "__main__":
    key = jax.random.PRNGKey(0)
    k_x, k_p = jax.random.split(key)

    batch = 8
    x = jax.random.normal(k_x, (batch, INPUT_DIM), jnp.float32)
    weight, bias = init_params(k_p)

    # One-time layout/dtype prep (would live with the params in a real model).
    w_t, b = prepare_params(weight, bias)

    out = source_nn_forward(x, w_t, b)
    out = jax.block_until_ready(out)
    assert out.shape == (batch, OUTPUT_DIM)
    assert out.dtype == jnp.float32

    # Tight check vs a reference that uses the same bf16 operands + f32 accumulation.
    x_bf = x.astype(jnp.bfloat16).astype(jnp.float32)
    w_bf = weight.astype(jnp.bfloat16).astype(jnp.float32)
    ref_bf16 = jnp.maximum(
        jnp.dot(x_bf, w_bf.T, precision=jax.lax.Precision.HIGHEST) + bias, 0.0
    )
    assert jnp.allclose(out, ref_bf16, atol=2e-3, rtol=2e-3)

    # Loose sanity check vs the pure-float32 PyTorch-equivalent reference.
    ref_f32 = jnp.maximum(x @ weight.T + bias, 0.0)
    assert jnp.allclose(out, ref_f32, atol=3e-2, rtol=3e-2)

    print("KERNEL_OK")
</pallas_src>

<mosaic_0001>
module attributes {stable_mosaic.version = 11 : i64} {
  func.func @linear_relu_kernel(%arg0: i32, %arg1: memref<8x300xf32, #tpu.memory_space<vmem>>, %arg2: memref<300x250xbf16, #tpu.memory_space<vmem>>, %arg3: memref<1x250xf32, #tpu.memory_space<vmem>>, %arg4: memref<8x250xf32, #tpu.memory_space<vmem>>) attributes {dimension_semantics = [#tpu.dimension_semantics<parallel>], iteration_bounds = array<i64: 1>, scalar_prefetch = 0 : i64, scratch_operands = 0 : i64, tpu.core_type = #tpu.core_type<tc>, window_params = [{transform_indices = @transform_0, window_bounds = array<i64: 8, 300>}, {pipeline_mode = #tpu.pipeline_mode<synchronous>, transform_indices = @transform_1, window_bounds = array<i64: 300, 250>}, {pipeline_mode = #tpu.pipeline_mode<synchronous>, transform_indices = @transform_2, window_bounds = array<i64: 1, 250>}, {transform_indices = @transform_3, window_bounds = array<i64: 8, 250>}]} {
    %c0 = arith.constant 0 : index
    %c0_0 = arith.constant 0 : index
    %0 = vector.load %arg1[%c0, %c0_0] : memref<8x300xf32, #tpu.memory_space<vmem>>, vector<8x300xf32>
    %1 = arith.truncf %0 : vector<8x300xf32> to vector<8x300xbf16>
    %c0_1 = arith.constant 0 : index
    %c0_2 = arith.constant 0 : index
    %2 = vector.load %arg2[%c0_1, %c0_2] : memref<300x250xbf16, #tpu.memory_space<vmem>>, vector<300x250xbf16>
    %cst = arith.constant dense<0.000000e+00> : vector<8x250xf32>
    %3 = tpu.matmul %1, %2, %cst {dimension_numbers = #tpu.dot_dimension_numbers<[1], [0], [0], [1], [0, 0, 1, 1], [], []>} : vector<8x300xbf16>, vector<300x250xbf16>, vector<8x250xf32> -> vector<8x250xf32>
    %c0_3 = arith.constant 0 : index
    %c0_4 = arith.constant 0 : index
    %4 = vector.load %arg3[%c0_3, %c0_4] : memref<1x250xf32, #tpu.memory_space<vmem>>, vector<1x250xf32>
    %5 = vector.broadcast %4 : vector<1x250xf32> to vector<8x250xf32>
    %6 = arith.addf %3, %5 : vector<8x250xf32>
    %cst_5 = arith.constant 0.000000e+00 : f32
    %7 = vector.broadcast %cst_5 : f32 to vector<8x250xf32>
    %8 = arith.maximumf %6, %7 : vector<8x250xf32>
    %c0_6 = arith.constant 0 : index
    %c0_7 = arith.constant 0 : index
    %9 = vector.load %arg4[%c0_6, %c0_7] : memref<8x250xf32, #tpu.memory_space<vmem>>, vector<8x250xf32>
    tpu.vector_store %arg4[%c0_6, %c0_7], %8 {strides = array<i32>} : memref<8x250xf32, #tpu.memory_space<vmem>>, vector<8x250xf32>,
    return
  }
  func.func @transform_0(%arg0: i32) -> (i32, i32) {
    %c0_i32 = arith.constant 0 : i32
    %c0_i32_0 = arith.constant 0 : i32
    return %arg0, %c0_i32 : i32, i32
  }
  func.func @transform_1(%arg0: i32) -> (i32, i32) {
    %c0_i32 = arith.constant 0 : i32
    %c0_i32_0 = arith.constant 0 : i32
    %c0_i32_1 = arith.constant 0 : i32
    return %c0_i32, %c0_i32_0 : i32, i32
  }
  func.func @transform_2(%arg0: i32) -> (i32, i32) {
    %c0_i32 = arith.constant 0 : i32
    %c0_i32_0 = arith.constant 0 : i32
    %c0_i32_1 = arith.constant 0 : i32
    return %c0_i32, %c0_i32_0 : i32, i32
  }
  func.func @transform_3(%arg0: i32) -> (i32, i32) {
    %c0_i32 = arith.constant 0 : i32
    %c0_i32_0 = arith.constant 0 : i32
    return %arg0, %c0_i32 : i32, i32
  }
}

</mosaic_0001>

<bundles_post_ra>
// kernel: tpu_custom_call.1
= control target key start
LH: loop header
LB: loop body
LE: loop exit
PB: predicated region body
PF: predicated region fallthrough
CT: control target
= control target key end

     0   :  { %8 = vsyncpa [#allocation3], 0  ;;  %s607_s0 = inlined_call_operand.hbm [shape: f32[8,300], index: 0, kind: input, shape index: {}]   ;;  %s608_s1 = inlined_call_operand.hbm [shape: bf16[300,250], index: 1, kind: input, shape index: {}]   ;;  %s609_s2 = inlined_call_operand.vmem [shape: f32[1,250], index: 2, kind: input, shape index: {}]   ;;  %s610_s3 = inlined_call_operand.hbm [shape: f32[8,250], index: 3, kind: output, shape index: {}]  }
   0x1   :  { %9 = vsyncpa [#allocation6], 0 }
   0x2   :  { %10 = vsyncpa [#allocation4], 0  ;;  %s569_s12 = smov [#allocation2]   ;;  %s570_s14 = smov [#allocation5]  }
   0x3   :  { %s17_s13 = sshll.u32 %s569_s12, 4  ;;  %s26_s15 = sshll.u32 %s570_s14, 4  ;;  %s18_s13 = int_to_ptr.vmem [resolvable:$true] %s17_s13  ;;  %s27_s15 = int_to_ptr.vmem [resolvable:$true] %s26_s15 }
   0x4   :  { %s511_s16 = scalar_lea.vmem %s18_s13, 384  ;;  %p516_p1 = scmp.lt.s32.totalorder %s18_s13, %s18_s13 }
   0x5   :  { %p512_p0 = scmp.ne.s32.totalorder %s18_s13, %s511_s16  ;;  %p517_p2 = scmp.lt.s32.totalorder %s511_s16, %s511_s16 }
   0x7   :  { %p518_p3 = por %p517_p2, %p516_p1 }
   0x9   :  { %p519_p4 = pnand %p518_p3, %p512_p0 }
   0xb   :  { %522 = shalt.err (!%p519_p4)
}
   0xc   :  { %20 = dma.hbm_to_vmem [thread:$0]  %s607_s0, 384, %s18_s13, [#allocation3]  }
   0xd   :  { %s531_s19 = scalar_lea.vmem %s27_s15, 4864  ;;  %p536_p6 = scmp.lt.s32.totalorder %s27_s15, %s27_s15 }
   0xe   :  { %p532_p5 = scmp.ne.s32.totalorder %s27_s15, %s531_s19  ;;  %p537_p7 = scmp.lt.s32.totalorder %s531_s19, %s531_s19 }
  0x10   :  { %p538_p8 = por %p537_p7, %p536_p6 }
  0x12   :  { %p539_p9 = pnand %p538_p8, %p532_p5 }
  0x14   :  { %542 = shalt.err (!%p539_p9)
}
  0x15   :  { %s571_s20 = smov 128   ;;  %s572_s21 = smov 8  }
  0x16   :  { %32 = dma.hbm_to_vmem [thread:$0]  %s608_s1, 4864, %s27_s15, [#allocation6], %s571_s20, %s571_s20, %s572_s21  }
  0x17   :  { %563 = dma.done.wait [#allocation3], 384  }
  0x18   :  { %564 = vsyncadd [#allocation3], 4294966912 }
  0x19   :  { %565 = dma.done.wait [#allocation6], 4864  }
  0x1a   :  { %566 = vsyncadd [#allocation6], 4294962432  ;;  %v573_v0 = vmov 0   ;;  %v446_v1 = vld [vmem:[#allocation5 + $0x74] ss:$8 sps:$4 sm:$0xff]   ;;  %vm290_vm0 = vcmask 1045504   ;;  %v88_v50 = vlaneseq }
  0x1b   :  { %370 = vmatprep.mubr.bf16.mxu1 %v573_v0  ;;  %v448_v2 = vld [vmem:[#allocation5 + $0x70] ss:$8 sps:$4 sm:$0xff]   ;;  %297 = vmatprep.subr.bf16.mxu0 %v446_v1  ;;  %v449_v3 = vld [vmem:[#allocation5 + $0x64] ss:$8 sps:$4 sm:$0xff]   ;;  %v451_v4 = vld [vmem:[#allocation5 + $0x60] ss:$8 sps:$4 sm:$0xff]  }
  0x1c   :  { %298 = vmatpush1.bf16.msra.mxu0 %v448_v2  ;;  %v452_v5 = vld [vmem:[#allocation5 + $0x54] ss:$8 sps:$4 sm:$0xff]   ;;  %v454_v6 = vld [vmem:[#allocation5 + $0x50] ss:$8 sps:$4 sm:$0xff]   ;;  %v455_v7 = vld [vmem:[#allocation5 + $0x44] ss:$8 sps:$4 sm:$0xff]  }
  0x1d   :  { %299 = vmatprep.subr.bf16.mxu0 %v449_v3  ;;  %v457_v8 = vld [vmem:[#allocation5 + $0x40] ss:$8 sps:$4 sm:$0xff]   ;;  %v458_v9 = vld [vmem:[#allocation5 + $0x34] ss:$8 sps:$4 sm:$0xff]   ;;  %v460_v10 = vld [vmem:[#allocation5 + $0x30] ss:$8 sps:$4 sm:$0xff]  }
  0x1e   :  { %v461_v11 = vld [vmem:[#allocation5 + $0x24] ss:$8 sps:$4 sm:$0xff]   ;;  %v487_v13 = vld [vmem:[#allocation5 + $0x120] ss:$8 sps:$4 sm:$0x3f]   ;;  %v44_v23 = vld [vmem:[#allocation2 + $0x10] sm:$0xff] }
  0x1f   :  { %v484_v12 = vld [vmem:[#allocation5 + $0x124] ss:$8 sps:$4 sm:$0x3f]   ;;  %v463_v14 = vld [vmem:[#allocation5 + $0x20] ss:$8 sps:$4 sm:$0xff]   ;;  %v292_v16 = vsel %vm290_vm0, %v487_v13, 0  ;;  %v47_v28 = vpack.c.bf16 %v44_v23, %v44_v23 }
  0x20   :  { %300 = vmatpush1.bf16.msra.mxu0 %v451_v4  ;;  %438 = vmatprep.subr.msk.bf16.mxu1 %vm290_vm0, %v484_v12  ;;  %v464_v15 = vld [vmem:[#allocation5 + $0x14] ss:$8 sps:$4 sm:$0xff]   ;;  %v493_v18 = vld [vmem:[#allocation5 + $0x110] ss:$8 sps:$4 sm:$0xff]   ;;  %v496_v20 = vld [vmem:[#allocation5 + $0x104] ss:$8 sps:$4 sm:$0xff]  }
  0x21   :  { %301 = vmatprep.subr.bf16.mxu0 %v452_v5  ;;  %v490_v17 = vld [vmem:[#allocation5 + $0x114] ss:$8 sps:$4 sm:$0xff]   ;;  %349 = vmatpush1.bf16.msra.mxu1 %v292_v16  ;;  %v466_v19 = vld [vmem:[#allocation5 + $0x10] ss:$8 sps:$4 sm:$0xff]   ;;  %v467_v21 = vld [vmem:[#allocation5 + $0x4] ss:$8 sps:$4 sm:$0xff]  }
  0x22   :  { %350 = vmatprep.subr.bf16.mxu1 %v490_v17  ;;  %v499_v22 = vld [vmem:[#allocation5 + $0x100] ss:$8 sps:$4 sm:$0xff]   ;;  %v43_v24 = vld [vmem:[#allocation2 + $0x8] sm:$0xff]  ;;  %vm286_vm1 = vcmask 359424   ;;  %v473_v30 = vld [vmem:[#allocation5 + $0xe4] ss:$8 sps:$4 sm:$0xff]  }
  0x23   :  { %v46_v25 = vpack.c.bf16 %v43_v24, %v43_v24  ;;  %v469_v26 = vld [vmem:[#allocation5] ss:$8 sps:$4 sm:$0xff]   ;;  %v470_v27 = vld [vmem:[#allocation5 + $0xf4] ss:$8 sps:$4 sm:$0xff]   ;;  %v472_v29 = vld [vmem:[#allocation5 + $0xf0] ss:$8 sps:$4 sm:$0xff]  }
  0x24   :  { %302 = vmatpush1.bf16.msra.mxu0 %v454_v6  ;;  %v475_v31 = vld [vmem:[#allocation5 + $0xe0] ss:$8 sps:$4 sm:$0xff]   ;;  %v476_v32 = vld [vmem:[#allocation5 + $0xd4] ss:$8 sps:$4 sm:$0xff]   ;;  %v478_v33 = vld [vmem:[#allocation5 + $0xd0] ss:$8 sps:$4 sm:$0xff]  }
  0x25   :  { %303 = vmatprep.subr.bf16.mxu0 %v455_v7  ;;  %351 = vmatpush1.bf16.msra.mxu1 %v493_v18  ;;  %v479_v34 = vld [vmem:[#allocation5 + $0xc4] ss:$8 sps:$4 sm:$0xff]   ;;  %v481_v35 = vld [vmem:[#allocation5 + $0xc0] ss:$8 sps:$4 sm:$0xff]   ;;  %v482_v36 = vld [vmem:[#allocation5 + $0xb4] ss:$8 sps:$4 sm:$0xff]  }
  0x26   :  { %352 = vmatprep.subr.bf16.mxu1 %v496_v20  ;;  %329 = vmatprep.mubr.bf16.mxu0 %v46_v25  ;;  %v486_v37 = vld [vmem:[#allocation5 + $0xb0] ss:$8 sps:$4 sm:$0xff]   ;;  %v488_v38 = vld [vmem:[#allocation5 + $0xa4] ss:$8 sps:$4 sm:$0xff]   ;;  %v492_v39 = vld [vmem:[#allocation5 + $0xa0] ss:$8 sps:$4 sm:$0xff]  }
  0x27   :  { %v494_v40 = vld [vmem:[#allocation5 + $0x94] ss:$8 sps:$4 sm:$0xff]   ;;  %v498_v41 = vld [vmem:[#allocation5 + $0x90] ss:$8 sps:$4 sm:$0xff]   ;;  %v500_v42 = vld [vmem:[#allocation5 + $0x84] ss:$8 sps:$4 sm:$0xff]  }
  0x28   :  { %304 = vmatpush1.bf16.msra.mxu0 %v457_v8  ;;  %v502_v43 = vld [vmem:[#allocation5 + $0x80] ss:$8 sps:$4 sm:$0xff]   ;;  %v89_v51 = vshrl.u32 %v88_v50, 7  ;;  %s574_s24 = smov [#allocation7]   ;;  %vm382_vm2 = vcmask 998400  }
  0x29   :  { %305 = vmatprep.subr.bf16.mxu0 %v458_v9  ;;  %353 = vmatpush1.bf16.msra.mxu1 %v499_v22  ;;  %v42_v44 = vld [vmem:[#allocation2] sm:$0xff]  ;;  %s390_s25 = sshll.u32 %s574_s24, 4  ;;  %s391_s25 = int_to_ptr.vmem [resolvable:$true] %s390_s25 }
  0x2a   :  { %v45_v45 = vpack.c.bf16 %v42_v44, %v42_v44  ;;  %v90_v52 = vsub.s32 0, %v89_v51  ;;  %v86_v53 = vld [vmem:[%s609_s2] sm:$0x3]  ;;  %v94_v54 = vsub.s32 1, %v89_v51  ;;  %s543_s2 = scalar_lea.vmem %s391_s25, 256  ;;  %p548_p11 = scmp.lt.s32.totalorder %s391_s25, %s391_s25 }
  0x2b   :  { %p544_p10 = scmp.ne.s32.totalorder %s391_s25, %s543_s2  ;;  %p549_p12 = scmp.lt.s32.totalorder %s543_s2, %s543_s2 }
  0x2c   :  { %306 = vmatpush1.bf16.msra.mxu0 %v460_v10  ;;  %439 = vmatmul.mubr.msk.bf16.vlgmr.msra.gmra.mxu1 %vm286_vm1, %v47_v28  ;;  %v91_v55 = vrot.slane %v86_v53, %v90_v52  ;;  %v95_v56 = vrot.slane %v86_v53, %v94_v54 }
  0x2d   :  { %307 = vmatprep.subr.bf16.mxu0 %v461_v11  ;;  %p550_p13 = por %p549_p12, %p548_p11 }
  0x2f   :  { %p551_p0 = pnand %p550_p13, %p544_p10 }
  0x30   :  { %308 = vmatpush1.bf16.msra.mxu0 %v463_v14 }
  0x31   :  { %309 = vmatprep.subr.bf16.mxu0 %v464_v15 }
  0x34   :  { %310 = vmatpush1.bf16.msra.mxu0 %v466_v19 }
  0x35   :  { %311 = vmatprep.subr.bf16.mxu0 %v467_v21 }
  0x38   :  { %312 = vmatpush1.bf16.msra.mxu0 %v469_v26 }
  0x39   :  { %313 = vmatprep.subr.bf16.mxu0 %v470_v27 }
  0x3c   :  { %314 = vmatpush2.bf16.msra.mxu0 %v472_v29 }
  0x3d   :  { %315 = vmatprep.subr.bf16.mxu0 %v473_v30 }
  0x40   :  { %316 = vmatpush2.bf16.msra.mxu0 %v475_v31 }
  0x41   :  { %317 = vmatprep.subr.bf16.mxu0 %v476_v32 }
  0x44   :  { %318 = vmatpush2.bf16.msra.mxu0 %v478_v33 }
  0x45   :  { %319 = vmatprep.subr.bf16.mxu0 %v479_v34 }
  0x48   :  { %320 = vmatpush2.bf16.msra.mxu0 %v481_v35 }
  0x49   :  { %321 = vmatprep.subr.bf16.mxu0 %v482_v36 }
  0x4c   :  { %322 = vmatpush2.bf16.msra.mxu0 %v486_v37 }
  0x4d   :  { %323 = vmatprep.subr.bf16.mxu0 %v488_v38 }
  0x50   :  { %324 = vmatpush2.bf16.msra.mxu0 %v492_v39 }
  0x51   :  { %325 = vmatprep.subr.bf16.mxu0 %v494_v40 }
  0x54   :  { %326 = vmatpush2.bf16.msra.mxu0 %v498_v41 }
  0x55   :  { %327 = vmatprep.subr.bf16.mxu0 %v500_v42 }
  0x58   :  { %328 = vmatpush2.bf16.msra.mxu0 %v502_v43 }
  0x5b   :  { %330 = vmatmul.mubr.bf16.vlgmr.msra.gmra.mxu0 %v45_v45 }
  0xec   :  { %v372_v46 = vpop.f32.mrf.mxu1 }
  0xee   :  { %v374_v47 = vpop.f32.mrf.mxu1 }
  0xf0   :  { %v376_v48 = vpop.f32.mrf.mxu1 }
  0xf2   :  { %v377_v49 = vpop.f32.mrf.mxu1 }
 0x11b   :  { %v331_v57 = vpop.f32.mrf.mxu0 }
 0x11c   :  { %v332_v58 = vadd.f32 %v331_v57, %v91_v55 }
 0x11d   :  { %v333_v59 = vpop.f32.mrf.mxu0 }
 0x11e   :  { %v373_v60 = vadd.f32 %v372_v46, %v332_v58  ;;  %v334_v61 = vadd.f32 %v333_v59, %v95_v56 }
 0x11f   :  { %v335_v62 = vpop.f32.mrf.mxu0 }
 0x120   :  { %v379_v63 = vmax.f32 %v373_v60, 0.0  ;;  %v375_v0 = vadd.f32 %v374_v47, %v334_v61 }
 0x121   :  { %v336_v1 = vpop.f32.mrf.mxu0 }
 0x122   :  { %381 = vst [vmem:[#allocation7] sm:$0xff] %v379_v63  ;;  %v380_v2 = vmax.f32 %v375_v0, 0.0 }
 0x124   :  { %383 = vst.msk [vmem:[#allocation7 + $0x8] sm:$0xff] %vm382_vm2, %v380_v2 }
 0x125   :  { %554 = shalt.err (!%p551_p0)
}
 0x126   :  { %393 = dma.vmem_to_hbm [thread:$0]  %s391_s25, 256, %s610_s3, [#allocation4]  }
 0x127   :  { %567 = dma.done.wait [#allocation4], 256  }
 0x128   :  { %568 = vsyncadd [#allocation4], 4294967040 }
 0x129   :  { %397 = vsyncpa [#allocation3], 1 }
 0x12a   :  { %398 = vsyncpa [#allocation6], 1 }
 0x12b   :  { %399 = vsyncpa [#allocation4], 1 }

</bundles_post_ra>
